<compile_context>
chip_gen: v6e
topology: v6e:2x2x1
jax: 0.10.0
libtpu: 0.0.40
codegen_flags: <defaults>
</compile_context>

<pallas_src>
import math

import jax
import jax.numpy as jnp
from jax import lax
from jax.experimental import pallas as pl
from jax.experimental.pallas import tpu as pltpu

_LANES = 128
_SUBLANES = 8


def _make_exclude_min_kernel(total_rows, tile_rows, steps_per_part, has_ragged):
    n_chunks = tile_rows // _SUBLANES

    def _fold(o_ref, x_f32):
        # Leading-axis min over (n_chunks, 8, 128): pure VPU vreg mins.
        x3 = x_f32.reshape(n_chunks, _SUBLANES, _LANES)
        o_ref[0] = jnp.minimum(o_ref[0], x3.min(axis=0))

    def kernel(a_ref, o_ref):
        s = pl.program_id(1)

        # Fresh accumulator at the start of every parallel slice's reduction.
        # The output block is resident across the "arbitrary" axis, so it acts
        # as the accumulator directly (no VMEM scratch needed).
        @pl.when(s == 0)
        def _init():
            o_ref[...] = jnp.full(o_ref.shape, jnp.inf, o_ref.dtype)

        if not has_ragged:
            # Divisible case: every block is fully valid, no masking at all.
            _fold(o_ref, a_ref[...].astype(jnp.float32))
        else:
            block_idx = pl.program_id(0) * steps_per_part + s
            row_start = block_idx * tile_rows
            is_full = row_start + tile_rows <= total_rows

            # Hot path: fully-valid block.
            @pl.when(is_full)
            def _full():
                _fold(o_ref, a_ref[...].astype(jnp.float32))

            # Ragged / duplicated block: mask invalid rows with +inf.
            @pl.when(jnp.logical_not(is_full))
            def _partial():
                x = a_ref[...].astype(jnp.float32)
                rid = row_start + lax.broadcasted_iota(
                    jnp.int32, (tile_rows, _LANES), 0)
                _fold(o_ref, jnp.where(rid < total_rows, x, jnp.inf))

    return kernel


def exclude_loss(attention, *, tile_rows=None,
                 target_block_bytes=2 * 1024 * 1024):
    """Pallas equivalent of ExcludeLoss.forward: (global min of attention)**2.

    Assumes a floating-point `attention` (as in the MIL module).
    """
    x = attention
    n = math.prod(x.shape)
    rows = n // _LANES
    tail = n % _LANES

    # Tiny inputs: a kernel launch costs more than the op itself.
    if rows < _SUBLANES:
        m = jnp.min(x).astype(jnp.float32)
        return (m * m).astype(x.dtype)

    flat = x.reshape(-1)
    if tail:
        # Rare ragged case: reduce the (<128-element) tail in plain JAX and
        # fold it in; the bulk of the data stays on the kernel path.
        tail_min = jnp.min(flat[rows * _LANES:]).astype(jnp.float32)
        main = flat[: rows * _LANES]
    else:
        tail_min = None
        main = flat
    x2d = main.reshape(rows, _LANES)

    # Block size: ~target_block_bytes of the *native* dtype per grid step,
    # a multiple of 8 sublanes, capped at the problem size. 2 MiB blocks
    # double-buffer to 4 MiB -> safe on v5e/v6e/v7x VMEM while sitting near
    # the HBM roofline for a pure-streaming reduction.
    itemsize = jnp.dtype(x.dtype).itemsize
    if tile_rows is None:
        tile_rows = max(_SUBLANES,
                        (target_block_bytes // (_LANES * itemsize))
                        // _SUBLANES * _SUBLANES)
    else:
        tile_rows = max(_SUBLANES, (tile_rows // _SUBLANES) * _SUBLANES)
    tile_rows = min(tile_rows, (rows // _SUBLANES) * _SUBLANES)

    total_blocks = pl.cdiv(rows, tile_rows)
    # Two partial reductions so v7x's two TensorCores can split HBM traffic
    # (negligible overhead on 1-TC v5e/v6e).
    num_parts = 2 if total_blocks >= 2 else 1
    steps_per_part = pl.cdiv(total_blocks, num_parts)

    # Static flag: emit the masking branch only when it can actually trigger
    # (non-divisible row count, or duplicated trailing grid steps).
    has_ragged = (rows % tile_rows != 0) or \
                 (num_parts * steps_per_part != total_blocks)

    def in_index_map(p, s):
        # Clamp so duplicated trailing steps re-read a valid block; their
        # contribution is masked to +inf in the kernel (min is idempotent).
        return (jnp.minimum(p * steps_per_part + s, total_blocks - 1), 0)

    kernel = _make_exclude_min_kernel(rows, tile_rows, steps_per_part,
                                      has_ragged)

    partials = pl.pallas_call(
        kernel,
        out_shape=jax.ShapeDtypeStruct((num_parts, _SUBLANES, _LANES),
                                       jnp.float32),
        grid_spec=pltpu.PrefetchScalarGridSpec(
            num_scalar_prefetch=0,
            grid=(num_parts, steps_per_part),
            in_specs=[pl.BlockSpec((tile_rows, _LANES), in_index_map)],
            out_specs=pl.BlockSpec((1, _SUBLANES, _LANES),
                                   lambda p, s: (p, 0, 0)),
        ),
        compiler_params=pltpu.CompilerParams(
            dimension_semantics=("parallel", "arbitrary"),
            vmem_limit_bytes=32 * 1024 * 1024,
        ),
    )(x2d)

    # Tiny epilogue: reduce the (P, 8, 128) partials, fold the tail, square.
    m = jnp.min(partials)
    if tail_min is not None:
        m = jnp.minimum(m, tail_min)
    return (m * m).astype(x.dtype)


if __name__ == "__main__":
    key = jax.random.PRNGKey(0)
    k1, k2, k3, k4, k5 = jax.random.split(key, 5)

    # Main example: small attention map (batch=2, channels=4, 16x16).
    x1 = jax.random.uniform(k1, (2, 4, 16, 16), dtype=jnp.float32)
    r1 = exclude_loss(x1)
    jax.block_until_ready(r1)
    assert jnp.allclose(r1, jnp.min(x1) ** 2, rtol=1e-6, atol=1e-6), r1

    # Ragged element count: <128-element tail folded in outside the kernel.
    x2 = jax.random.normal(k2, (7, 300), dtype=jnp.float32)
    r2 = exclude_loss(x2)
    jax.block_until_ready(r2)
    assert jnp.allclose(r2, jnp.min(x2) ** 2, rtol=1e-6, atol=1e-6), r2

    # Multi-block + dual-partial path: forced small tile exercises the grid
    # pipeline, partial-block masking, and duplicate-block clamping.
    x3 = jax.random.normal(k3, (64, 130), dtype=jnp.float32)
    r3 = exclude_loss(x3, tile_rows=16)
    jax.block_until_ready(r3)
    assert jnp.allclose(r3, jnp.min(x3) ** 2, rtol=1e-6, atol=1e-6), r3

    # Tiny-input fallback (pure JAX path).
    x4 = jax.random.uniform(k4, (3, 5), dtype=jnp.float32)
    r4 = exclude_loss(x4)
    jax.block_until_ready(r4)
    assert jnp.allclose(r4, jnp.min(x4) ** 2, rtol=1e-6, atol=1e-6), r4

    # Narrow-dtype path: bf16 blocks streamed from HBM, cast in-kernel.
    x5 = jax.random.normal(k5, (4, 8, 32), dtype=jnp.bfloat16)
    r5 = exclude_loss(x5)
    jax.block_until_ready(r5)
    ref5 = (jnp.min(x5) ** 2).astype(jnp.float32)
    assert jnp.allclose(r5.astype(jnp.float32), ref5, rtol=1e-2, atol=1e-3), r5

    print("KERNEL_OK")
</pallas_src>

<mosaic_0001>
module attributes {stable_mosaic.version = 11 : i64} {
  func.func @kernel(%arg0: i32, %arg1: i32, %arg2: memref<16x128xf32, #tpu.memory_space<vmem>>, %arg3: memref<1x8x128xf32, #tpu.memory_space<vmem>>) attributes {dimension_semantics = [#tpu.dimension_semantics<parallel>, #tpu.dimension_semantics<arbitrary>], iteration_bounds = array<i64: 1, 1>, scalar_prefetch = 0 : i64, scratch_operands = 0 : i64, tpu.core_type = #tpu.core_type<tc>, window_params = [{transform_indices = @transform_0, window_bounds = array<i64: 16, 128>}, {transform_indices = @transform_1, window_bounds = array<i64: 1, 8, 128>}]} {
    %c0_i32 = arith.constant 0 : i32
    %0 = arith.cmpi eq, %arg1, %c0_i32 : i32
    %1 = arith.extui %0 : i1 to i32
    %c0_i32_0 = arith.constant 0 : i32
    %2 = arith.cmpi ne, %1, %c0_i32_0 : i32
    scf.if %2 {
      %cst_8 = arith.constant 0x7F800000 : f32
      %12 = vector.broadcast %cst_8 : f32 to vector<1x8x128xf32>
      %c0_9 = arith.constant 0 : index
      %c0_10 = arith.constant 0 : index
      %c0_11 = arith.constant 0 : index
      %13 = vector.load %arg3[%c0_9, %c0_10, %c0_11] : memref<1x8x128xf32, #tpu.memory_space<vmem>>, vector<1x8x128xf32>
      tpu.vector_store %arg3[%c0_9, %c0_10, %c0_11], %12 {strides = array<i32>} : memref<1x8x128xf32, #tpu.memory_space<vmem>>, vector<1x8x128xf32>,
    } else {
    }
    %c0 = arith.constant 0 : index
    %c0_1 = arith.constant 0 : index
    %3 = vector.load %arg2[%c0, %c0_1] : memref<16x128xf32, #tpu.memory_space<vmem>>, vector<16x128xf32>
    %4 = vector.shape_cast %3 : vector<16x128xf32> to vector<2x8x128xf32>
    %c0_2 = arith.constant 0 : index
    %c0_3 = arith.constant 0 : index
    %c0_4 = arith.constant 0 : index
    %5 = vector.load %arg3[%c0_2, %c0_3, %c0_4] : memref<1x8x128xf32, #tpu.memory_space<vmem>>, vector<1x8x128xf32>
    %6 = vector.shape_cast %5 : vector<1x8x128xf32> to vector<8x128xf32>
    %cst = arith.constant dense<0x7F800000> : vector<8x128xf32>
    %7 = vector.multi_reduction <minimumf>, %4, %cst [0] : vector<2x8x128xf32> to vector<8x128xf32>
    %8 = arith.minimumf %6, %7 : vector<8x128xf32>
    %c0_5 = arith.constant 0 : index
    %c0_6 = arith.constant 0 : index
    %c0_7 = arith.constant 0 : index
    %9 = vector.load %arg3[%c0_5, %c0_6, %c0_7] : memref<1x8x128xf32, #tpu.memory_space<vmem>>, vector<1x8x128xf32>
    %10 = vector.shape_cast %9 : vector<1x8x128xf32> to vector<8x128xf32>
    %11 = vector.shape_cast %8 : vector<8x128xf32> to vector<1x8x128xf32>
    tpu.vector_store %arg3[%c0_5, %c0_6, %c0_7], %11 {strides = array<i32>} : memref<1x8x128xf32, #tpu.memory_space<vmem>>, vector<1x8x128xf32>,
    return
  }
  func.func @transform_0(%arg0: i32, %arg1: i32) -> (i32, i32) {
    %c1_i32 = arith.constant 1 : i32
    %0 = arith.muli %arg0, %c1_i32 : i32
    %1 = arith.addi %0, %arg1 : i32
    %c0_i32 = arith.constant 0 : i32
    %2 = arith.minsi %1, %c0_i32 : i32
    %c0_i32_0 = arith.constant 0 : i32
    %c0_i32_1 = arith.constant 0 : i32
    return %2, %c0_i32_0 : i32, i32
  }
  func.func @transform_1(%arg0: i32, %arg1: i32) -> (i32, i32, i32) {
    %c0_i32 = arith.constant 0 : i32
    %c0_i32_0 = arith.constant 0 : i32
    %c0_i32_1 = arith.constant 0 : i32
    return %arg0, %c0_i32, %c0_i32_0 : i32, i32, i32
  }
}

</mosaic_0001>

<bundles_post_ra>
// kernel: tpu_custom_call.1
= control target key start
LH: loop header
LB: loop body
LE: loop exit
PB: predicated region body
PF: predicated region fallthrough
CT: control target
= control target key end

     0   :  { %6 = vsyncpa [#allocation3], 0  ;;  %s130_s0 = inlined_call_operand.hbm [shape: f32[16,128], index: 0, kind: input, shape index: {}]   ;;  %s131_s1 = inlined_call_operand.hbm [shape: f32[1,8,128], index: 1, kind: output, shape index: {}]  }
   0x1   :  { %7 = vsyncpa [#allocation4], 0  ;;  %s110_s6 = smov [#allocation2]  }
   0x2   :  { %s19_s7 = sshll.u32 %s110_s6, 4  ;;  %s20_s7 = int_to_ptr.vmem [resolvable:$true] %s19_s7 }
   0x3   :  { %s74_s8 = scalar_lea.vmem %s20_s7, 256  ;;  %p79_p1 = scmp.lt.s32.totalorder %s20_s7, %s20_s7 }
   0x4   :  { %p75_p0 = scmp.ne.s32.totalorder %s20_s7, %s74_s8  ;;  %p80_p2 = scmp.lt.s32.totalorder %s74_s8, %s74_s8 }
   0x6   :  { %p81_p3 = por %p80_p2, %p79_p1 }
   0x8   :  { %p82_p4 = pnand %p81_p3, %p75_p0 }
   0xa   :  { %85 = shalt.err (!%p82_p4)
}
   0xb   :  { %s111_s9 = smov 128   ;;  %s112_s10 = smov 8  }
   0xc   :  { %25 = dma.hbm_to_vmem [thread:$0]  %s130_s0, 256, %s20_s7, [#allocation3], %s111_s9, %s111_s9, %s112_s10  }
   0xd   :  { %106 = dma.done.wait [#allocation3], 256  }
   0xe   :  { %107 = vsyncadd [#allocation3], 4294967040  ;;  %v38_v0 = vld [vmem:[#allocation2] sm:$0xff]  ;;  %v39_v1 = vld [vmem:[#allocation2 + $0x8] sm:$0xff]  ;;  %s113_s13 = smov [#allocation5]  }
   0xf   :  { %s50_s14 = sshll.u32 %s113_s13, 4  ;;  %v41_v2 = vmin.f32 %v38_v0, %v39_v1  ;;  %s51_s14 = int_to_ptr.vmem [resolvable:$true] %s50_s14 }
  0x10   :  { %s86_s15 = scalar_lea.vmem %s51_s14, 128  ;;  %p91_p6 = scmp.lt.s32.totalorder %s51_s14, %s51_s14 }
  0x11   :  { %43 = vst [vmem:[#allocation5] sm:$0xff] %v41_v2  ;;  %p87_p5 = scmp.ne.s32.totalorder %s51_s14, %s86_s15  ;;  %p92_p7 = scmp.lt.s32.totalorder %s86_s15, %s86_s15 }
  0x13   :  { %p93_p8 = por %p92_p7, %p91_p6 }
  0x15   :  { %p94_p9 = pnand %p93_p8, %p87_p5 }
  0x17   :  { %97 = shalt.err (!%p94_p9)
}
  0x18   :  { %53 = dma.vmem_to_hbm [thread:$0]  %s51_s14, 128, %s131_s1, [#allocation4]  }
  0x19   :  { %108 = dma.done.wait [#allocation4], 128  }
  0x1a   :  { %109 = vsyncadd [#allocation4], 4294967168 }
  0x1b   :  { %57 = vsyncpa [#allocation3], 1 }
  0x1c   :  { %58 = vsyncpa [#allocation4], 1 }

</bundles_post_ra>
